<compile_context>
chip_gen: v5e
topology: v5e:2x2
jax: 0.10.0
libtpu: 0.0.40
codegen_flags: <defaults>
</compile_context>

<pallas_src>
import functools
import numpy as np
import jax
import jax.numpy as jnp
from jax import lax
from jax.experimental import pallas as pl
from jax.experimental.pallas import tpu as pltpu

NEG_INF = -1e30  # stands in for float('-inf'); exp underflows to exactly 0 in fp32


# --------------------------------------------------------------------------
# Fused causal multi-head self-attention kernel (one grid step = one batch elt)
# --------------------------------------------------------------------------
def _mha_causal_kernel(x_ref, mask_ref, wqkv_ref, bqkv_ref, wo_ref, bo_ref,
                       out_ref, *, num_heads):
    S, E = x_ref.shape[1], x_ref.shape[2]
    Dh = E // num_heads
    scale = 1.0 / float(np.sqrt(Dh))

    x = x_ref[0]                                                        # [S, E]

    # Fused in-projection: single lane-dense matmul on the MXU.
    qkv = jnp.dot(x, wqkv_ref[...], preferred_element_type=jnp.float32) \
        + bqkv_ref[...]                                                 # [S, 3E]
    q = qkv[:, 0:E] * scale        # torch scales q by 1/sqrt(head_dim)
    k = qkv[:, E:2 * E]
    v = qkv[:, 2 * E:3 * E]

    mask = mask_ref[...]                                                # [S, S] additive

    head_outs = []
    for h in range(num_heads):                 # static unroll, num_heads is small
        sl = slice(h * Dh, (h + 1) * Dh)
        qh = q[:, sl]                                                   # [S, Dh]
        kh = k[:, sl]
        vh = v[:, sl]
        # scores(i, j) = qh[i] . kh[j]  → MXU (contract the head dim)
        s = lax.dot_general(qh, kh, (((1,), (1,)), ((), ())),
                            preferred_element_type=jnp.float32)         # [S, S]
        s = s + mask                                                    # causal bias
        m = jnp.max(s, axis=-1, keepdims=True)
        e = jnp.exp(s - m)
        denom = jnp.sum(e, axis=-1, keepdims=True)
        p = e * pl.reciprocal(denom, approx=True)                       # EUP rcp
        head_outs.append(jnp.dot(p, vh, preferred_element_type=jnp.float32))

    ctx = jnp.concatenate(head_outs, axis=-1)                           # [S, E]
    out = jnp.dot(ctx, wo_ref[...], preferred_element_type=jnp.float32) \
        + bo_ref[...]                                                   # [S, E]
    out_ref[0] = out


def masked_causal_attention(x, attn_mask, params, *, num_heads):
    B, S, E = x.shape
    assert E % num_heads == 0
    kernel = functools.partial(_mha_causal_kernel, num_heads=num_heads)
    return pl.pallas_call(
        kernel,
        out_shape=jax.ShapeDtypeStruct((B, S, E), jnp.float32),
        grid=(B,),
        in_specs=[
            pl.BlockSpec((1, S, E), lambda b: (b, 0, 0)),       # x (per-batch block)
            pl.BlockSpec((S, S), lambda b: (0, 0)),             # additive causal mask
            pl.BlockSpec((E, 3 * E), lambda b: (0, 0)),         # in_proj_weight.T
            pl.BlockSpec((1, 3 * E), lambda b: (0, 0)),         # in_proj_bias
            pl.BlockSpec((E, E), lambda b: (0, 0)),             # out_proj.weight.T
            pl.BlockSpec((1, E), lambda b: (0, 0)),             # out_proj.bias
        ],
        out_specs=pl.BlockSpec((1, S, E), lambda b: (b, 0, 0)),
        compiler_params=pltpu.CompilerParams(dimension_semantics=("parallel",)),
    )(x, attn_mask, params["w_qkv"], params["b_qkv"], params["w_out"], params["b_out"])


# --------------------------------------------------------------------------
# Module-equivalent helpers (mask buffer + parameter init) and pure-JAX ref
# --------------------------------------------------------------------------
def build_causal_mask(size):
    # torch: triu(ones).T == 1 → allowed (j <= i); 0 where allowed, -inf elsewhere.
    allowed = np.tril(np.ones((size, size), dtype=bool))
    return jnp.asarray(np.where(allowed, 0.0, NEG_INF).astype(np.float32))


def init_mha_params(key, embed_dim):
    k1, k2, k3, k4 = jax.random.split(key, 4)

    def xavier(k, shape):
        lim = float(np.sqrt(6.0 / (shape[0] + shape[1])))
        return jax.random.uniform(k, shape, jnp.float32, -lim, lim)

    # torch default biases are zeros; small random biases here exercise the path.
    return dict(
        w_qkv=xavier(k1, (embed_dim, 3 * embed_dim)),            # in_proj_weight.T
        b_qkv=0.01 * jax.random.normal(k3, (1, 3 * embed_dim), jnp.float32),
        w_out=xavier(k2, (embed_dim, embed_dim)),                # out_proj.weight.T
        b_out=0.01 * jax.random.normal(k4, (1, embed_dim), jnp.float32),
    )


def mha_causal_reference(x, attn_mask, params, *, num_heads):
    B, S, E = x.shape
    Dh = E // num_heads
    qkv = jnp.einsum("bse,ef->bsf", x, params["w_qkv"]) + params["b_qkv"][0]
    q, k, v = qkv[..., :E], qkv[..., E:2 * E], qkv[..., 2 * E:]

    def split(t):
        return t.reshape(B, S, num_heads, Dh).transpose(0, 2, 1, 3)

    qh, kh, vh = split(q), split(k), split(v)
    s = jnp.einsum("bhqd,bhkd->bhqk", qh, kh) / np.sqrt(Dh) + attn_mask[None, None]
    p = jax.nn.softmax(s, axis=-1)
    ctx = jnp.einsum("bhqk,bhkd->bhqd", p, vh).transpose(0, 2, 1, 3).reshape(B, S, E)
    return ctx @ params["w_out"] + params["b_out"][0]


# --------------------------------------------------------------------------
if __name__ == "__main__":
    B, SIZE, EMBED, HEADS = 2, 16, 128, 4   # batch, seq (mask size), embed_dim, heads

    key = jax.random.PRNGKey(0)
    kx, kp = jax.random.split(key)
    node_embeddings = jax.random.normal(kx, (B, SIZE, EMBED), jnp.float32)
    attn_mask = build_causal_mask(SIZE)
    params = init_mha_params(kp, EMBED)

    out = masked_causal_attention(node_embeddings, attn_mask, params, num_heads=HEADS)
    out = jax.block_until_ready(out)
    assert out.shape == (B, SIZE, EMBED), out.shape
    assert bool(jnp.all(jnp.isfinite(out)))

    ref = mha_causal_reference(node_embeddings, attn_mask, params, num_heads=HEADS)
    max_err = float(jnp.max(jnp.abs(out - ref)))
    assert max_err < 5e-2, f"max abs err vs reference: {max_err}"

    print("KERNEL_OK")
</pallas_src>

<mosaic_0001>
module attributes {stable_mosaic.version = 11 : i64} {
  func.func @_mha_causal_kernel(%arg0: i32, %arg1: memref<1x16x128xf32, #tpu.memory_space<vmem>>, %arg2: memref<16x16xf32, #tpu.memory_space<vmem>>, %arg3: memref<128x384xf32, #tpu.memory_space<vmem>>, %arg4: memref<1x384xf32, #tpu.memory_space<vmem>>, %arg5: memref<128x128xf32, #tpu.memory_space<vmem>>, %arg6: memref<1x128xf32, #tpu.memory_space<vmem>>, %arg7: memref<1x16x128xf32, #tpu.memory_space<vmem>>) attributes {dimension_semantics = [#tpu.dimension_semantics<parallel>], iteration_bounds = array<i64: 2>, scalar_prefetch = 0 : i64, scratch_operands = 0 : i64, tpu.core_type = #tpu.core_type<tc>, window_params = [{transform_indices = @transform_0, window_bounds = array<i64: 1, 16, 128>}, {pipeline_mode = #tpu.pipeline_mode<synchronous>, transform_indices = @transform_1, window_bounds = array<i64: 16, 16>}, {pipeline_mode = #tpu.pipeline_mode<synchronous>, transform_indices = @transform_2, window_bounds = array<i64: 128, 384>}, {pipeline_mode = #tpu.pipeline_mode<synchronous>, transform_indices = @transform_3, window_bounds = array<i64: 1, 384>}, {pipeline_mode = #tpu.pipeline_mode<synchronous>, transform_indices = @transform_4, window_bounds = array<i64: 128, 128>}, {pipeline_mode = #tpu.pipeline_mode<synchronous>, transform_indices = @transform_5, window_bounds = array<i64: 1, 128>}, {transform_indices = @transform_6, window_bounds = array<i64: 1, 16, 128>}]} {
    %c0 = arith.constant 0 : index
    %c0_0 = arith.constant 0 : index
    %c0_1 = arith.constant 0 : index
    %0 = vector.load %arg1[%c0, %c0_0, %c0_1] : memref<1x16x128xf32, #tpu.memory_space<vmem>>, vector<1x16x128xf32>
    %1 = vector.shape_cast %0 : vector<1x16x128xf32> to vector<16x128xf32>
    %c0_2 = arith.constant 0 : index
    %c0_3 = arith.constant 0 : index
    %2 = vector.load %arg3[%c0_2, %c0_3] : memref<128x384xf32, #tpu.memory_space<vmem>>, vector<128x384xf32>
    %cst = arith.constant dense<0.000000e+00> : vector<16x384xf32>
    %3 = tpu.matmul %1, %2, %cst {dimension_numbers = #tpu.dot_dimension_numbers<[1], [0], [0], [1], [0, 0, 1, 1], [], []>} : vector<16x128xf32>, vector<128x384xf32>, vector<16x384xf32> -> vector<16x384xf32>
    %c0_4 = arith.constant 0 : index
    %c0_5 = arith.constant 0 : index
    %4 = vector.load %arg4[%c0_4, %c0_5] : memref<1x384xf32, #tpu.memory_space<vmem>>, vector<1x384xf32>
    %5 = vector.broadcast %4 : vector<1x384xf32> to vector<16x384xf32>
    %6 = arith.addf %3, %5 : vector<16x384xf32>
    %7 = vector.extract_strided_slice %6 {offsets = [0, 0], sizes = [16, 128], strides = [1, 1]} : vector<16x384xf32> to vector<16x128xf32>
    %cst_6 = arith.constant 0.176776692 : f32
    %8 = vector.broadcast %cst_6 : f32 to vector<16x128xf32>
    %9 = arith.mulf %7, %8 : vector<16x128xf32>
    %10 = vector.extract_strided_slice %6 {offsets = [0, 128], sizes = [16, 128], strides = [1, 1]} : vector<16x384xf32> to vector<16x128xf32>
    %11 = vector.extract_strided_slice %6 {offsets = [0, 256], sizes = [16, 128], strides = [1, 1]} : vector<16x384xf32> to vector<16x128xf32>
    %c0_7 = arith.constant 0 : index
    %c0_8 = arith.constant 0 : index
    %12 = vector.load %arg2[%c0_7, %c0_8] : memref<16x16xf32, #tpu.memory_space<vmem>>, vector<16x16xf32>
    %13 = vector.extract_strided_slice %9 {offsets = [0, 0], sizes = [16, 32], strides = [1, 1]} : vector<16x128xf32> to vector<16x32xf32>
    %14 = vector.extract_strided_slice %10 {offsets = [0, 0], sizes = [16, 32], strides = [1, 1]} : vector<16x128xf32> to vector<16x32xf32>
    %15 = vector.extract_strided_slice %11 {offsets = [0, 0], sizes = [16, 32], strides = [1, 1]} : vector<16x128xf32> to vector<16x32xf32>
    %cst_9 = arith.constant dense<0.000000e+00> : vector<16x16xf32>
    %16 = tpu.matmul %13, %14, %cst_9 {dimension_numbers = #tpu.dot_dimension_numbers<[1], [1], [0], [0], [0, 0, 1, 0], [], []>} : vector<16x32xf32>, vector<16x32xf32>, vector<16x16xf32> -> vector<16x16xf32>
    %17 = arith.addf %16, %12 : vector<16x16xf32>
    %cst_10 = arith.constant dense<0xFF800000> : vector<16xf32>
    %18 = vector.multi_reduction <maximumf>, %17, %cst_10 [1] : vector<16x16xf32> to vector<16xf32>
    %19 = vector.shape_cast %18 : vector<16xf32> to vector<16x1xf32>
    %20 = vector.broadcast %19 : vector<16x1xf32> to vector<16x16xf32>
    %21 = arith.subf %17, %20 : vector<16x16xf32>
    %22 = math.exp %21 : vector<16x16xf32>
    %cst_11 = arith.constant dense<0.000000e+00> : vector<16xf32>
    %23 = vector.multi_reduction <add>, %22, %cst_11 [1] : vector<16x16xf32> to vector<16xf32>
    %24 = vector.shape_cast %23 : vector<16xf32> to vector<16x1xf32>
    %25 = tpu.reciprocal %24 {approx = true} : vector<16x1xf32> -> vector<16x1xf32>
    %26 = vector.broadcast %25 : vector<16x1xf32> to vector<16x16xf32>
    %27 = arith.mulf %22, %26 : vector<16x16xf32>
    %cst_12 = arith.constant dense<0.000000e+00> : vector<16x32xf32>
    %28 = tpu.matmul %27, %15, %cst_12 {dimension_numbers = #tpu.dot_dimension_numbers<[1], [0], [0], [1], [0, 0, 1, 1], [], []>} : vector<16x16xf32>, vector<16x32xf32>, vector<16x32xf32> -> vector<16x32xf32>
    %29 = vector.extract_strided_slice %9 {offsets = [0, 32], sizes = [16, 32], strides = [1, 1]} : vector<16x128xf32> to vector<16x32xf32>
    %30 = vector.extract_strided_slice %10 {offsets = [0, 32], sizes = [16, 32], strides = [1, 1]} : vector<16x128xf32> to vector<16x32xf32>
    %31 = vector.extract_strided_slice %11 {offsets = [0, 32], sizes = [16, 32], strides = [1, 1]} : vector<16x128xf32> to vector<16x32xf32>
    %cst_13 = arith.constant dense<0.000000e+00> : vector<16x16xf32>
    %32 = tpu.matmul %29, %30, %cst_13 {dimension_numbers = #tpu.dot_dimension_numbers<[1], [1], [0], [0], [0, 0, 1, 0], [], []>} : vector<16x32xf32>, vector<16x32xf32>, vector<16x16xf32> -> vector<16x16xf32>
    %33 = arith.addf %32, %12 : vector<16x16xf32>
    %cst_14 = arith.constant dense<0xFF800000> : vector<16xf32>
    %34 = vector.multi_reduction <maximumf>, %33, %cst_14 [1] : vector<16x16xf32> to vector<16xf32>
    %35 = vector.shape_cast %34 : vector<16xf32> to vector<16x1xf32>
    %36 = vector.broadcast %35 : vector<16x1xf32> to vector<16x16xf32>
    %37 = arith.subf %33, %36 : vector<16x16xf32>
    %38 = math.exp %37 : vector<16x16xf32>
    %cst_15 = arith.constant dense<0.000000e+00> : vector<16xf32>
    %39 = vector.multi_reduction <add>, %38, %cst_15 [1] : vector<16x16xf32> to vector<16xf32>
    %40 = vector.shape_cast %39 : vector<16xf32> to vector<16x1xf32>
    %41 = tpu.reciprocal %40 {approx = true} : vector<16x1xf32> -> vector<16x1xf32>
    %42 = vector.broadcast %41 : vector<16x1xf32> to vector<16x16xf32>
    %43 = arith.mulf %38, %42 : vector<16x16xf32>
    %cst_16 = arith.constant dense<0.000000e+00> : vector<16x32xf32>
    %44 = tpu.matmul %43, %31, %cst_16 {dimension_numbers = #tpu.dot_dimension_numbers<[1], [0], [0], [1], [0, 0, 1, 1], [], []>} : vector<16x16xf32>, vector<16x32xf32>, vector<16x32xf32> -> vector<16x32xf32>
    %45 = vector.extract_strided_slice %9 {offsets = [0, 64], sizes = [16, 32], strides = [1, 1]} : vector<16x128xf32> to vector<16x32xf32>
    %46 = vector.extract_strided_slice %10 {offsets = [0, 64], sizes = [16, 32], strides = [1, 1]} : vector<16x128xf32> to vector<16x32xf32>
    %47 = vector.extract_strided_slice %11 {offsets = [0, 64], sizes = [16, 32], strides = [1, 1]} : vector<16x128xf32> to vector<16x32xf32>
    %cst_17 = arith.constant dense<0.000000e+00> : vector<16x16xf32>
    %48 = tpu.matmul %45, %46, %cst_17 {dimension_numbers = #tpu.dot_dimension_numbers<[1], [1], [0], [0], [0, 0, 1, 0], [], []>} : vector<16x32xf32>, vector<16x32xf32>, vector<16x16xf32> -> vector<16x16xf32>
    %49 = arith.addf %48, %12 : vector<16x16xf32>
    %cst_18 = arith.constant dense<0xFF800000> : vector<16xf32>
    %50 = vector.multi_reduction <maximumf>, %49, %cst_18 [1] : vector<16x16xf32> to vector<16xf32>
    %51 = vector.shape_cast %50 : vector<16xf32> to vector<16x1xf32>
    %52 = vector.broadcast %51 : vector<16x1xf32> to vector<16x16xf32>
    %53 = arith.subf %49, %52 : vector<16x16xf32>
    %54 = math.exp %53 : vector<16x16xf32>
    %cst_19 = arith.constant dense<0.000000e+00> : vector<16xf32>
    %55 = vector.multi_reduction <add>, %54, %cst_19 [1] : vector<16x16xf32> to vector<16xf32>
    %56 = vector.shape_cast %55 : vector<16xf32> to vector<16x1xf32>
    %57 = tpu.reciprocal %56 {approx = true} : vector<16x1xf32> -> vector<16x1xf32>
    %58 = vector.broadcast %57 : vector<16x1xf32> to vector<16x16xf32>
    %59 = arith.mulf %54, %58 : vector<16x16xf32>
    %cst_20 = arith.constant dense<0.000000e+00> : vector<16x32xf32>
    %60 = tpu.matmul %59, %47, %cst_20 {dimension_numbers = #tpu.dot_dimension_numbers<[1], [0], [0], [1], [0, 0, 1, 1], [], []>} : vector<16x16xf32>, vector<16x32xf32>, vector<16x32xf32> -> vector<16x32xf32>
    %61 = vector.extract_strided_slice %9 {offsets = [0, 96], sizes = [16, 32], strides = [1, 1]} : vector<16x128xf32> to vector<16x32xf32>
    %62 = vector.extract_strided_slice %10 {offsets = [0, 96], sizes = [16, 32], strides = [1, 1]} : vector<16x128xf32> to vector<16x32xf32>
    %63 = vector.extract_strided_slice %11 {offsets = [0, 96], sizes = [16, 32], strides = [1, 1]} : vector<16x128xf32> to vector<16x32xf32>
    %cst_21 = arith.constant dense<0.000000e+00> : vector<16x16xf32>
    %64 = tpu.matmul %61, %62, %cst_21 {dimension_numbers = #tpu.dot_dimension_numbers<[1], [1], [0], [0], [0, 0, 1, 0], [], []>} : vector<16x32xf32>, vector<16x32xf32>, vector<16x16xf32> -> vector<16x16xf32>
    %65 = arith.addf %64, %12 : vector<16x16xf32>
    %cst_22 = arith.constant dense<0xFF800000> : vector<16xf32>
    %66 = vector.multi_reduction <maximumf>, %65, %cst_22 [1] : vector<16x16xf32> to vector<16xf32>
    %67 = vector.shape_cast %66 : vector<16xf32> to vector<16x1xf32>
    %68 = vector.broadcast %67 : vector<16x1xf32> to vector<16x16xf32>
    %69 = arith.subf %65, %68 : vector<16x16xf32>
    %70 = math.exp %69 : vector<16x16xf32>
    %cst_23 = arith.constant dense<0.000000e+00> : vector<16xf32>
    %71 = vector.multi_reduction <add>, %70, %cst_23 [1] : vector<16x16xf32> to vector<16xf32>
    %72 = vector.shape_cast %71 : vector<16xf32> to vector<16x1xf32>
    %73 = tpu.reciprocal %72 {approx = true} : vector<16x1xf32> -> vector<16x1xf32>
    %74 = vector.broadcast %73 : vector<16x1xf32> to vector<16x16xf32>
    %75 = arith.mulf %70, %74 : vector<16x16xf32>
    %cst_24 = arith.constant dense<0.000000e+00> : vector<16x32xf32>
    %76 = tpu.matmul %75, %63, %cst_24 {dimension_numbers = #tpu.dot_dimension_numbers<[1], [0], [0], [1], [0, 0, 1, 1], [], []>} : vector<16x16xf32>, vector<16x32xf32>, vector<16x32xf32> -> vector<16x32xf32>
    %77 = tpu.concatenate %28, %44, %60, %76 in 1 : vector<16x32xf32>, vector<16x32xf32>, vector<16x32xf32>, vector<16x32xf32> -> vector<16x128xf32>
    %c0_25 = arith.constant 0 : index
    %c0_26 = arith.constant 0 : index
    %78 = vector.load %arg5[%c0_25, %c0_26] : memref<128x128xf32, #tpu.memory_space<vmem>>, vector<128x128xf32>
    %cst_27 = arith.constant dense<0.000000e+00> : vector<16x128xf32>
    %79 = tpu.matmul %77, %78, %cst_27 {dimension_numbers = #tpu.dot_dimension_numbers<[1], [0], [0], [1], [0, 0, 1, 1], [], []>} : vector<16x128xf32>, vector<128x128xf32>, vector<16x128xf32> -> vector<16x128xf32>
    %c0_28 = arith.constant 0 : index
    %c0_29 = arith.constant 0 : index
    %80 = vector.load %arg6[%c0_28, %c0_29] : memref<1x128xf32, #tpu.memory_space<vmem>>, vector<1x128xf32>
    %81 = vector.broadcast %80 : vector<1x128xf32> to vector<16x128xf32>
    %82 = arith.addf %79, %81 : vector<16x128xf32>
    %c0_30 = arith.constant 0 : index
    %c0_31 = arith.constant 0 : index
    %c0_32 = arith.constant 0 : index
    %83 = vector.load %arg7[%c0_30, %c0_31, %c0_32] : memref<1x16x128xf32, #tpu.memory_space<vmem>>, vector<1x16x128xf32>
    %84 = vector.shape_cast %83 : vector<1x16x128xf32> to vector<16x128xf32>
    %85 = vector.shape_cast %82 : vector<16x128xf32> to vector<1x16x128xf32>
    tpu.vector_store %arg7[%c0_30, %c0_31, %c0_32], %85 {strides = array<i32>} : memref<1x16x128xf32, #tpu.memory_space<vmem>>, vector<1x16x128xf32>,
    return
  }
  func.func @transform_0(%arg0: i32) -> (i32, i32, i32) {
    %c0_i32 = arith.constant 0 : i32
    %c0_i32_0 = arith.constant 0 : i32
    %c0_i32_1 = arith.constant 0 : i32
    return %arg0, %c0_i32, %c0_i32_0 : i32, i32, i32
  }
  func.func @transform_1(%arg0: i32) -> (i32, i32) {
    %c0_i32 = arith.constant 0 : i32
    %c0_i32_0 = arith.constant 0 : i32
    %c0_i32_1 = arith.constant 0 : i32
    return %c0_i32, %c0_i32_0 : i32, i32
  }
  func.func @transform_2(%arg0: i32) -> (i32, i32) {
    %c0_i32 = arith.constant 0 : i32
    %c0_i32_0 = arith.constant 0 : i32
    %c0_i32_1 = arith.constant 0 : i32
    return %c0_i32, %c0_i32_0 : i32, i32
  }
  func.func @transform_3(%arg0: i32) -> (i32, i32) {
    %c0_i32 = arith.constant 0 : i32
    %c0_i32_0 = arith.constant 0 : i32
    %c0_i32_1 = arith.constant 0 : i32
    return %c0_i32, %c0_i32_0 : i32, i32
  }
  func.func @transform_4(%arg0: i32) -> (i32, i32) {
    %c0_i32 = arith.constant 0 : i32
    %c0_i32_0 = arith.constant 0 : i32
    %c0_i32_1 = arith.constant 0 : i32
    return %c0_i32, %c0_i32_0 : i32, i32
  }
  func.func @transform_5(%arg0: i32) -> (i32, i32) {
    %c0_i32 = arith.constant 0 : i32
    %c0_i32_0 = arith.constant 0 : i32
    %c0_i32_1 = arith.constant 0 : i32
    return %c0_i32, %c0_i32_0 : i32, i32
  }
  func.func @transform_6(%arg0: i32) -> (i32, i32, i32) {
    %c0_i32 = arith.constant 0 : i32
    %c0_i32_0 = arith.constant 0 : i32
    %c0_i32_1 = arith.constant 0 : i32
    return %arg0, %c0_i32, %c0_i32_0 : i32, i32, i32
  }
}

</mosaic_0001>

<bundles_post_ra>
// kernel: tpu_custom_call.1
= control target key start
LH: loop header
LB: loop body
LE: loop exit
PB: predicated region body
PF: predicated region fallthrough
CT: control target
= control target key end

     0   :  { %11 = vsyncpa [#allocation3], 0  ;;  %s1797_s0 = inlined_call_operand.hbm [shape: f32[2,16,128], index: 0, kind: input, shape index: {}]   ;;  %s1798_s1 = inlined_call_operand.hbm [shape: f32[16,16], index: 1, kind: input, shape index: {}]   ;;  %s1799_s2 = inlined_call_operand.hbm [shape: f32[128,384], index: 2, kind: input, shape index: {}]   ;;  %s1800_s3 = inlined_call_operand.hbm [shape: f32[1,384], index: 3, kind: input, shape index: {}]   ;;  %s1801_s4 = inlined_call_operand.hbm [shape: f32[128,128], index: 4, kind: input, shape index: {}]   ;;  %s1802_s5 = inlined_call_operand.vmem [shape: f32[1,128], index: 5, kind: input, shape index: {}]   ;;  %s1803_s6 = inlined_call_operand.hbm [shape: f32[2,16,128], index: 6, kind: output, shape index: {}]  }
   0x1   :  { %13 = vsyncpa [#allocation3 + $0x1], 0 }
   0x2   :  { %14 = vsyncpa [#allocation6], 0 }
   0x3   :  { %15 = vsyncpa [#allocation9], 0 }
   0x4   :  { %16 = vsyncpa [#allocation4], 0 }
   0x5   :  { %18 = vsyncpa [#allocation4 + $0x1], 0  ;;  %s1515_s21 = smov 0   ;;  %s1517_s22 = smov 0  }
   0x6   :  { %s1519_s23 = smov 0   ;;  %s1521_s24 = smov 0  }
   0x7 LB: > { %s1536_s25 = sadd.s32 4294967295, %s1465_s24   ;;  %s1049_s26 = sadd.s32 4294967294, %s1465_s24   ;;  %s1465_s24 = sphi %s1521_s24, %s1818_s24   ;;  %s1461_s23 = sphi %s1519_s23, %s1817_s23   ;;  %s1457_s22 = sphi %s1517_s22, %s1816_s22   ;;  %s1453_s21 = sphi %s1515_s21, %s1815_s21  }
   0x8   : > { %p44_p0 = scmp.ne.s32.totalorder %s1457_s22, %s1453_s21  ;;  %p45_p1 = scmp.eq.s32.totalorder %s1536_s25, 0 }
   0x9   : > { %p173_p2 = scmp.eq.s32.totalorder %s1536_s25, 1  ;;  %p179_p3 = scmp.eq.s32.totalorder %s1049_s26, 1 }
   0xa   : > { %p1545_p4 = por %p45_p1, %p44_p0  ;;  %p1050_p5 = scmp.ge.s32.totalorder %s1465_s24, 1 }
   0xb   : > { %p1550_p6 = por %p179_p3, %p44_p0  ;;  %p186_p7 = scmp.lt.s32.totalorder %s1465_s24, 3 }
   0xc   : > { %s197_s7 = sshll.u32 %s1798_s1, 4  ;;  %s1467_s9 = smov [#allocation5]   ;;  %s198_s7 = int_to_ptr.hbm [resolvable:$true] %s197_s7 }
   0xd   : > { %p1558_p8 = pnand %p1050_p5, %p186_p7  ;;  %s199_s10 = sshll.u32 %s1467_s9, 4  ;;  %s200_s10 = int_to_ptr.vmem [resolvable:$true] %s199_s10 }
   0xe   : > { %s226_s14 = sshll.u32 %s1800_s3, 4  ;;  %s1804_s15 = smov 128   ;;  %s227_s14 = int_to_ptr.hbm [resolvable:$true] %s226_s14 }
   0xf   : > { %p1117_p9 = pneg %p1558_p8  ;;  %s1805_s16 = smov 8  }
  0x10   : > { %s1470_s17 = smov [#allocation8]   ;;  %s211_s26 = sshll.u32 %s1799_s2, 4  ;;  %s212_s26 = int_to_ptr.hbm [resolvable:$true] %s211_s26 }
  0x11   : > { %p1566_p10 = pnand %p1117_p9, %p45_p1  ;;  %s228_s18 = sshll.u32 %s1470_s17, 4  ;;  %s229_s18 = int_to_ptr.vmem [resolvable:$true] %s228_s18 }
  0x12   : > { %s1471_s29 = smov [#allocation7]   ;;  %s1472_s12 = smov 384  }
  0x13   : > { %1120 = dma.hbm_to_vmem [thread:$0]  (!%p1566_p10), %s198_s7, 256, %s200_s10, [#allocation6], %s1804_s15, %s1804_s15, %s1805_s16  }
  0x14   : > { %1126 = dma.hbm_to_vmem [thread:$0]  (!%p1566_p10), %s227_s14, 48, %s229_s18, [#allocation9]  }
  0x15   : > { %s213_s30 = sshll.u32 %s1471_s29, 4  ;;  %s237_s10 = sshll.u32 %s1801_s4, 4  ;;  %s214_s30 = int_to_ptr.vmem [resolvable:$true] %s213_s30  ;;  %s238_s10 = int_to_ptr.hbm [resolvable:$true] %s237_s10 }
  0x16   : > { %s1473_s13 = smov 24   ;;  %s1474_s14 = smov [#allocation10]  }
  0x17   : > { %1123 = dma.hbm_to_vmem [thread:$0]  (!%p1566_p10), %s212_s26, 6144, %s214_s30, [#allocation6], %s1472_s12, %s1472_s12, %s1473_s13  }
  0x18   : > { %s239_s17 = sshll.u32 %s1474_s14, 4  ;;  %s1595_s18 = sadd.s32 1, %s1465_s24   ;;  %s240_s17 = int_to_ptr.vmem [resolvable:$true] %s239_s17 }
  0x19   : > { %1129 = dma.hbm_to_vmem [thread:$0]  (!%p1566_p10), %s238_s10, 2048, %s240_s17, [#allocation9], %s1804_s15, %s1804_s15, %s1805_s16  }
  0x1a   : > { %s31_s19 = sadd.s32 1, %s1461_s23  ;;  %s28_s20 = ssub.s32 %s1465_s24, %s1595_s18 }
  0x1b   : > { %p38_p12 = scmp.ne.s32.totalorder %s1461_s23, %s1457_s22  ;;  %p29_p13 = scmp.eq.s32.totalorder %s28_s20, 0 }
  0x1c   : > { %p39_p0 = scmp.eq.s32.totalorder %s1465_s24, 0  ;;  %p1142_p5 = scmp.lt.s32.totalorder %s1465_s24, 2 }
  0x1d   : > { %p1605_p3 = por %p173_p2, %p38_p12  ;;  %s256_s11 = sand.u32 1, %s1461_s23  }
  0x1e   : > { %s1611_s29 = scalar_select %p29_p13, %s1461_s23, %s31_s19  }
  0x1f   : > { %p40_p7 = por %p39_p0, %p38_p12  ;;  %s1056_s30 = sshll.u32 %s256_s11, 4 }
  0x20   : > { %s1095_s7 = sshll.u32 %s1465_s24, 4  ;;  %s260_s13 = scalar_lea.vmem [#allocation2], %s1056_s30 }
  0x21   : > { %s265_s12 = scalar_lea.hbm %s1797_s0, %s1095_s7  ;;  %s268_s14 = sshll.u32 %s260_s13, 4  ;;  %s269_s14 = int_to_ptr.vmem [resolvable:$true] %s268_s14 }
  0x22   : > { %s266_s17 = sshll.u32 %s265_s12, 4  ;;  %p1618_p2 = pnand %p1142_p5, %p40_p7  ;;  %s267_s17 = int_to_ptr.hbm [resolvable:$true] %s266_s17 }
  0x23   : > { %s257_s19 = scalar_lea.sflag [#allocation3], %s256_s11  ;;  %s1361_s15 = sshra.s32 %s267_s17, 4  ;;  %s1362_s15 = int_to_ptr.hbm [resolvable:$true] %s1361_s15 }
  0x24   : > { %s1363_s16 = scalar_lea.hbm %s1362_s15, 16  ;;  %p1365_p10 = pneg %p1618_p2 }
  0x25   : > { %p1364_p9 = scmp.ne.s32.totalorder %s1362_s15, %s1363_s16  ;;  %s1368_s9 = scalar_lea.hbm %s1797_s0, 32 }
  0x26   : > { %p1369_p0 = scmp.lt.s32.totalorder %s1362_s15, %s1797_s0  ;;  %p1370_p5 = scmp.lt.s32.totalorder %s1368_s9, %s1363_s16 }
  0x27   : > { %p1366_p12 = pnand %p1365_p10, %p1364_p9 }
  0x28   : > { %p1371_p7 = por %p1370_p5, %p1369_p0 }
  0x29   : > { %p1367_p13 = pneg %p1366_p12 }
  0x2b   : > { %p1372_p11 = pnand %p1371_p7, %p1367_p13 }
  0x2d   : > { %1375 = shalt.err (!%p1372_p11)
}
  0x2e   : > { %s1812_s11 = smov 8   ;;  %s1813_s13 = smov 128  }
  0x2f   : > { %1133 = dma.hbm_to_vmem [thread:$0]  (!%p1618_p2), %s267_s17, 256, %s269_s14, %s257_s19, %s1813_s13, %s1813_s13, %s1812_s11  }
  0x30   : > { %280 = sbr.rel (%p1558_p8) target bundleno = 1449 (0x5a9), region = 44  ;;  %s1638_s7 = sand.u32 (!%p1558_p8), 1, %s1457_s22  }
  0x31   : > { %s1060_s15 = sshll.u32 (!%p1558_p8), %s1638_s7, 4  ;;  %s283_s16 = scalar_lea.sflag (!%p1558_p8), [#allocation3], %s1638_s7 }
  0x32   : > { %s1644_s30 = scalar_lea.vmem (!%p1558_p8), [#allocation2], %s1060_s15 }
  0x35   : > { %1436 = dma.done.wait (%p1545_p4), %s283_s16, 256  }
  0x36   : > { %1438 = vsyncadd (%p1545_p4), %s283_s16, 4294967040 }
  0x37   : > { %1440 = dma.done.wait (%p45_p1), [#allocation6], 6400  }
  0x38   : > { %1442 = vsyncadd (%p45_p1), [#allocation6], 4294960896 }
  0x39   : > { %1444 = dma.done.wait (%p45_p1), [#allocation9], 2096  }
  0x3a   : > { %1446 = vsyncadd (%p45_p1), [#allocation9], 4294965200  ;;  %v384_v0 = vld [vmem:[#allocation7 + $0x170] sm:$0xff]  ;;  %v381_v1 = vld [vmem:[#allocation7 + $0x158] sm:$0xff]  ;;  %vm467_vm0 = vcmask 261120   ;;  %s1475_s27 = smov 64  }
  0x3b   : > { %417 = vmatpush.msra.mxu1 %v384_v0  ;;  %v378_v2 = vld [vmem:[#allocation7 + $0x140] sm:$0xff]  ;;  %v383_v3 = vld [vmem:[#allocation7 + $0x168] sm:$0xff]  ;;  %v380_v4 = vld [vmem:[#allocation7 + $0x150] sm:$0xff]  ;;  %s1476_s8 = smov 96   ;;  %s1477_s14 = smov 32   ;;  %vm503_vm1 = vcmask 130048  }
  0x3c   : > { %394 = vmatpush.msra.mxu0 %v383_v3  ;;  %v375_v5 = vld [vmem:[#allocation7 + $0x128] sm:$0xff]  ;;  %v377_v6 = vld [vmem:[#allocation7 + $0x138] sm:$0xff]  ;;  %v372_v7 = vld [vmem:[#allocation7 + $0x110] sm:$0xff]  ;;  %vm871_vm2 = vcmask 523264   ;;  %vm874_vm3 = vcmask 785408   ;;  %s335_s19 = scalar_lea.vmem [#allocation11], %s1060_s15 }
  0x3d   : > { %418 = vmatpush.msra.mxu1 %v381_v1  ;;  %v374_v8 = vld [vmem:[#allocation7 + $0x120] sm:$0xff]  ;;  %v369_v9 = vld [vmem:[#allocation7 + $0xf8] sm:$0xff]  ;;  %v371_v10 = vld [vmem:[#allocation7 + $0x108] sm:$0xff]  ;;  %s1096_s9 = sshll.u32 %s1536_s25, 4  ;;  %s935_s13 = sshll.u32 %s335_s19, 4  ;;  %s936_s13 = int_to_ptr.vmem [resolvable:$true] %s935_s13 }
  0x3e   : > { %395 = vmatpush.msra.mxu0 %v380_v4  ;;  %v366_v11 = vld [vmem:[#allocation7 + $0xe0] sm:$0xff]  ;;  %v368_v12 = vld [vmem:[#allocation7 + $0xf0] sm:$0xff]  ;;  %v385_v13 = vld [vmem:[#allocation7 + $0x178] sm:$0xff]  ;;  %s934_s11 = scalar_lea.hbm %s1803_s6, %s1096_s9 }
  0x3f   : > { %419 = vmatpush.msra.mxu1 %v378_v2  ;;  %v382_v14 = vld [vmem:[#allocation7 + $0x160] sm:$0xff]  ;;  %v363_v15 = vld [vmem:[#allocation7 + $0xc8] sm:$0xff]  ;;  %v365_v16 = vld [vmem:[#allocation7 + $0xd8] sm:$0xff]  ;;  %440 = vmatpush.msra.mxu2 %v385_v13  ;;  %s937_s16 = sshll.u32 %s934_s11, 4  ;;  %s938_s16 = int_to_ptr.hbm [resolvable:$true] %s937_s16 }
  0x40   : > { %396 = vmatpush.msra.mxu0 %v377_v6  ;;  %v379_v17 = vld [vmem:[#allocation7 + $0x148] sm:$0xff]  ;;  %v360_v18 = vld [vmem:[#allocation7 + $0xb0] sm:$0xff]  ;;  %v362_v19 = vld [vmem:[#allocation7 + $0xc0] sm:$0xff] }
  0x41   : > { %420 = vmatpush.msra.mxu1 %v375_v5  ;;  %441 = vmatpush.msra.mxu2 %v382_v14  ;;  %v376_v20 = vld [vmem:[#allocation7 + $0x130] sm:$0xff]  ;;  %v357_v21 = vld [vmem:[#allocation7 + $0x98] sm:$0xff]  ;;  %v359_v22 = vld [vmem:[#allocation7 + $0xa8] sm:$0xff] }
  0x42   : > { %397 = vmatpush.msra.mxu0 %v374_v8  ;;  %v373_v23 = vld [vmem:[#allocation7 + $0x118] sm:$0xff]  ;;  %v354_v24 = vld [vmem:[#allocation7 + $0x80] sm:$0xff]  ;;  %v356_v25 = vld [vmem:[#allocation7 + $0x90] sm:$0xff] }
  0x43   : > { %421 = vmatpush.msra.mxu1 %v372_v7  ;;  %442 = vmatpush.msra.mxu2 %v379_v17  ;;  %v370_v26 = vld [vmem:[#allocation7 + $0x100] sm:$0xff]  ;;  %v351_v27 = vld [vmem:[#allocation7 + $0x68] sm:$0xff]  ;;  %v353_v28 = vld [vmem:[#allocation7 + $0x78] sm:$0xff] }
  0x44   : > { %398 = vmatpush.msra.mxu0 %v371_v10  ;;  %v367_v29 = vld [vmem:[#allocation7 + $0xe8] sm:$0xff]  ;;  %v348_v30 = vld [vmem:[#allocation7 + $0x50] sm:$0xff]  ;;  %v350_v31 = vld [vmem:[#allocation7 + $0x60] sm:$0xff] }
  0x45   : > { %422 = vmatpush.msra.mxu1 %v369_v9  ;;  %443 = vmatpush.msra.mxu2 %v376_v20  ;;  %v364_v32 = vld [vmem:[#allocation7 + $0xd0] sm:$0xff]  ;;  %v345_v33 = vld [vmem:[#allocation7 + $0x38] sm:$0xff]  ;;  %v347_v34 = vld [vmem:[#allocation7 + $0x48] sm:$0xff] }
  0x46   : > { %399 = vmatpush.msra.mxu0 %v368_v12  ;;  %v361_v35 = vld [vmem:[#allocation7 + $0xb8] sm:$0xff]  ;;  %v342_v36 = vld [vmem:[#allocation7 + $0x20] sm:$0xff]  ;;  %v344_v37 = vld [vmem:[#allocation7 + $0x30] sm:$0xff] }
  0x47   : > { %423 = vmatpush.msra.mxu1 %v366_v11  ;;  %444 = vmatpush.msra.mxu2 %v373_v23  ;;  %v358_v38 = vld [vmem:[#allocation7 + $0xa0] sm:$0xff]  ;;  %v339_v39 = vld [vmem:[#allocation7 + $0x8] sm:$0xff]  ;;  %v341_v40 = vld [vmem:[#allocation7 + $0x18] sm:$0xff] }
  0x48   : > { %400 = vmatpush.msra.mxu0 %v365_v16  ;;  %v336_v41 = vld [vmem:[%s1644_s30] sm:$0xff]  ;;  %v355_v42 = vld [vmem:[#allocation7 + $0x88] sm:$0xff]  ;;  %v349_v45 = vld [vmem:[#allocation7 + $0x58] sm:$0xff] }
  0x49   : > { %424 = vmatpush.msra.mxu1 %v363_v15  ;;  %445 = vmatpush.msra.mxu2 %v370_v26  ;;  %v338_v43 = vld [vmem:[#allocation7] sm:$0xff]  ;;  %v352_v44 = vld [vmem:[#allocation7 + $0x70] sm:$0xff]  ;;  %v337_v47 = vld [vmem:[%s1644_s30 + $0x8] sm:$0xff]  ;;  %s923_s30 = scalar_lea.sflag [#allocation4], %s1638_s7 }
  0x4a   : > { %401 = vmatpush.msra.mxu0 %v362_v19  ;;  %v346_v46 = vld [vmem:[#allocation7 + $0x40] sm:$0xff]  ;;  %v343_v48 = vld [vmem:[#allocation7 + $0x28] sm:$0xff]  ;;  %v340_v49 = vld [vmem:[#allocation7 + $0x10] sm:$0xff] }
  0x4b   : > { %425 = vmatpush.msra.mxu1 %v360_v18  ;;  %446 = vmatpush.msra.mxu2 %v367_v29  ;;  %v386_v51 = vld [vmem:[#allocation8] sm:$0x7]  ;;  %v1687_v10 = vld [vmem:[#allocation5] sm:$0xff]  ;;  %v1691_v14 = vld [vmem:[#allocation5 + $0x8] sm:$0xff] }
  0x4c   : > { %402 = vmatpush.msra.mxu0 %v359_v22  ;;  %v389_v53 = vperm.slane %v386_v51, 1  ;;  %v388_v54 = vperm.slane %v386_v51, 0  ;;  %v390_v0 = vperm.slane %v386_v51, 2 }
  0x4d   : > { %426 = vmatpush.msra.mxu1 %v357_v21  ;;  %447 = vmatpush.msra.mxu2 %v364_v32 }
  0x4e   : > { %403 = vmatpush.msra.mxu0 %v356_v25 }
  0x4f   : > { %427 = vmatpush.msra.mxu1 %v354_v24  ;;  %448 = vmatpush.msra.mxu2 %v361_v35 }
  0x50   : > { %404 = vmatpush.msra.mxu0 %v353_v28 }
  0x51   : > { %428 = vmatpush.msra.mxu1 %v351_v27  ;;  %449 = vmatpush.msra.mxu2 %v358_v38 }
  0x52   : > { %405 = vmatpush.msra.mxu0 %v350_v31 }
  0x53   : > { %429 = vmatpush.msra.mxu1 %v348_v30  ;;  %450 = vmatpush.msra.mxu2 %v355_v42 }
  0x54   : > { %406 = vmatpush.msra.mxu0 %v347_v34 }
  0x55   : > { %430 = vmatpush.msra.mxu1 %v345_v33  ;;  %451 = vmatpush.msra.mxu2 %v352_v44 }
  0x56   : > { %407 = vmatpush.msra.mxu0 %v344_v37 }
  0x57   : > { %431 = vmatpush.msra.mxu1 %v342_v36  ;;  %452 = vmatpush.msra.mxu2 %v349_v45 }
  0x58   : > { %408 = vmatpush.msra.mxu0 %v341_v40 }
  0x59   : > { %432 = vmatpush.msra.mxu1 %v339_v39  ;;  %453 = vmatpush.msra.mxu2 %v346_v46 }
  0x5a   : > { %433 = vmatmul.f32.vlgmr.msra.gmra.mxu1 %v336_v41  ;;  %409 = vmatpush.msra.mxu0 %v338_v43 }
  0x5b   : > { %410 = vmatmul.f32.vlgmr.msra.gmra.mxu0 %v336_v41  ;;  %454 = vmatpush.msra.mxu2 %v343_v48 }
  0x5d   : > { %455 = vmatpush.msra.mxu2 %v340_v49 }
  0x5e   : > { %456 = vmatmul.f32.vlgmr.msra.gmra.mxu2 %v336_v41 }
  0x62   : > { %436 = vmatmul.f32.gmra.mxu1 %v337_v47 }
  0x63   : > { %413 = vmatmul.f32.gmra.mxu0 %v337_v47 }
  0x66   : > { %459 = vmatmul.f32.gmra.mxu2 %v337_v47 }
  0xd7   : > { %v434_v50 = vpop.f32.mrf.mxu1 }
  0xd8   : > { %v411_v52 = vpop.f32.mrf.mxu0  ;;  %v435_v58 = vadd.f32 %v434_v50, %v389_v53 }
  0xd9   : > { %v412_v57 = vadd.f32 %v411_v52, %v388_v54 }
  0xdb   : > { %v1663_v59 = vmul.f32 0.17677669, %v412_v57 }
  0xdf   : > { %v437_v55 = vpop.f32.mrf.mxu1 }
  0xe0   : > { %v438_v56 = vadd.f32 %v437_v55, %v389_v53  ;;  %v414_v60 = vpop.f32.mrf.mxu0 }
  0xe1   : > { %v415_v61 = vadd.f32 %v414_v60, %v388_v54  ;;  %v457_v63 = vpop.f32.mrf.mxu2 }
  0xe2   : > { %659 = vrot.lane.b32.xlu1 %v438_v56, %s1475_s27  ;;  %561 = vrot.lane.b32.xlu2 %v438_v56, %s1476_s8  ;;  %v1672_v2 = vadd.f32 %v457_v63, %v390_v0 }
  0xe3   : > { %1066 = vmatpush.xpose.msk.msra.mxu3 %vm467_vm0, %v438_v56  ;;  %v464_v62 = vmul.f32 0.17677669, %v415_v61 }
  0xe7   : > { %1067 = vmatpush.xpose.msk.msra.mxu3 %vm467_vm0, %v435_v58 }
  0xe9   : > { %v460_v1 = vpop.f32.mrf.mxu2 }
  0xea   : > { %1068 = vmatmul.msk.f32.vlgmr.msra.gmra.mxu3 %vm467_vm0, %v1663_v59  ;;  %559 = vrot.lane.b32.xlu2 %v435_v58, %s1476_s8  ;;  %v1674_v3 = vadd.f32 %v460_v1, %v390_v0 }
  0xec   : > { %546 = vmatpush.msrb.mxu3 %v1674_v3  ;;  %v1193_v1 = vpack.i.bf16 %v1672_v2, %v1674_v3 }
  0xee   : > { %547 = vmatpush.msrb.mxu3 %v1672_v2 }
  0xf2   : > { %1069 = vmatmul.msk.f32.gmra.mxu3 %vm467_vm0, %v464_v62  ;;  %657 = vrot.lane.b32.xlu2 %v435_v58, %s1475_s27 }
  0xfa   : > { %557 = vrot.lane.b32.xlu2 %v464_v62, %s1476_s8 }
 0x102   : > { %653 = vrot.lane.b32.xlu2 %v1663_v59, %s1475_s27 }
 0x10a   : > { %753 = vrot.lane.b32.xlu2 %v435_v58, %s1477_s14 }
 0x112   : > { %751 = vrot.lane.b32.xlu2 %v464_v62, %s1477_s14 }
 0x13c   : > { %v562_v4 = vpop.permute.xlu2 %561 }
 0x13d   : > { %1072 = vmatpush.xpose.msk.msra.mxu3 %vm467_vm0, %v562_v4 }
 0x144   : > { %v560_v5 = vpop.permute.xlu2 %559 }
 0x145   : > { %1073 = vmatpush.xpose.msk.msra.mxu3 %vm467_vm0, %v560_v5 }
 0x14c   : > { %v658_v6 = vpop.permute.xlu2 %657 }
 0x154   : > { %v660_v7 = vpop.permute.xlu1 %659  ;;  %v558_v8 = vpop.permute.xlu2 %557 }
 0x155   : > { %1078 = vmatpush.xpose.msk.msrb.mxu2 %vm467_vm0, %v660_v7 }
 0x159   : > { %1079 = vmatpush.xpose.msk.msrb.mxu2 %vm467_vm0, %v658_v6 }
 0x15c   : > { %v654_v9 = vpop.permute.xlu2 %653 }
 0x15d   : > { %1080 = vmatmul.msk.f32.vlgmr.msrb.gmra.mxu2 %vm467_vm0, %v654_v9 }
 0x164   : > { %v754_v38 = vpop.permute.xlu2 %753 }
 0x16c   : > { %v752_v44 = vpop.permute.xlu2 %751 }
 0x16d   : > { %v497_v11 = vpop.f32.mrf.mxu3 }
 0x16e   : > { %v498_v12 = vadd.f32 %v497_v11, %v1687_v10 }
 0x170   : > { %v504_v13 = vsel %vm503_vm1, %v498_v12, -inf }
 0x171   : > { %505 = vmax.xlane.f32.xlu0 %v504_v13 }
 0x175   : > { %v500_v15 = vpop.f32.mrf.mxu3 }
 0x176   : > { %v501_v16 = vadd.f32 %v500_v15, %v1691_v14 }
 0x178   : > { %v507_v17 = vsel %vm503_vm1, %v501_v16, -inf }
 0x179   : > { %508 = vmax.xlane.f32.xlu0 %v507_v17 }
 0x18d   : > { %555 = vrot.lane.b32.xlu0 %v1663_v59, %s1476_s8 }
 0x195   : > { %755 = vrot.lane.b32.xlu0 %v438_v56, %s1477_s14 }
 0x19d   : > { %655 = vrot.lane.b32.xlu0 %v464_v62, %s1475_s27 }
 0x1e0   : > { %v686_v18 = vpop.f32.mrf.mxu2 }
 0x1e1   : > { %v687_v19 = vadd.f32 %v686_v18, %v1687_v10 }
 0x1e3   : > { %v692_v20 = vsel %vm503_vm1, %v687_v19, -inf }
 0x1e4   : > { %v506_v21 = vpop.xlane.xlu0 %505  ;;  %693 = vmax.xlane.f32.xlu2 %v692_v20 }
 0x1e5   : > { %v510_v22 = vsub.f32 %v498_v12, %v506_v21 }
 0x1e7   : > { %v512_v23 = vmul.f32 1.442695, %v510_v22 }
 0x1e9   : > { %1209 = vpow2.f32 %v512_v23 }
 0x1ec   : > { %v509_v24 = vpop.xlane.xlu0 %508 }
 0x1ed   : > { %v511_v25 = vsub.f32 %v501_v16, %v509_v24 }
 0x1ef   : > { %v1210_v26 = vpop.eup %1209  ;;  %v514_v27 = vmul.f32 1.442695, %v511_v25 }
 0x1f0   : > { %v516_v28 = vsel %vm503_vm1, %v1210_v26, 0.0 }
 0x1f1   : > { %1211 = vpow2.f32 %v514_v27  ;;  %517 = vadd.xlane.f32.xlu1 %v516_v28 }
 0x1f7   : > { %v1212_v29 = vpop.eup %1211 }
 0x1f8   : > { %v519_v30 = vsel %vm503_vm1, %v1212_v29, 0.0 }
 0x1f9   : > { %520 = vadd.xlane.f32.xlu1 %v519_v30 }
 0x1ff   : > { %v556_v31 = vpop.permute.xlu0 %555 }
 0x207   : > { %v756_v32 = vpop.permute.xlu0 %755 }
 0x20f   : > { %v656_v33 = vpop.permute.xlu0 %655 }
 0x210   : > { %1081 = vmatmul.msk.f32.gmra.mxu2 %vm467_vm0, %v656_v33 }
 0x212   : > { %749 = vrot.lane.b32.xlu1 %v1663_v59, %s1477_s14 }
 0x257   : > { %v694_v51 = vpop.xlane.xlu2 %693 }
 0x258   : > { %v698_v54 = vsub.f32 %v687_v19, %v694_v51 }
 0x25a   : > { %v700_v56 = vmul.f32 1.442695, %v698_v54 }
 0x264   : > { %v518_v34 = vpop.xlane.xlu1 %517 }
 0x265   : > { %1213 = vrcp.f32 %v518_v34 }
 0x26b   : > { %v1214_v35 = vpop.eup %1213 }
 0x26c   : > { %v521_v36 = vpop.xlane.xlu1 %520  ;;  %v524_v37 = vmul.f32 %v1214_v35, %v1210_v26 }
 0x26d   : > { %1215 = vrcp.f32 %v521_v36 }
 0x26e   : > { %1070 = vmatmul.msk.f32.vlgmr.msrb.gmra.mxu3 %vm503_vm1, %v524_v37  ;;  %1217 = vpow2.f32 %v700_v56 }
 0x26f   : > { %1084 = vmatpush.xpose.msk.msrb.mxu3 %vm467_vm0, %v756_v32 }
 0x273   : > { %v1216_v39 = vpop.eup %1215  ;;  %1085 = vmatpush.xpose.msk.msrb.mxu3 %vm467_vm0, %v754_v38 }
 0x274   : > { %v525_v40 = vmul.f32 %v1216_v39, %v1212_v29  ;;  %v1726_v60 = vpop.eup %1217 }
 0x275   : > { %v704_v0 = vsel %vm503_vm1, %v1726_v60, 0.0 }
 0x276   : > { %1071 = vmatmul.msk.f32.gmra.mxu3 %vm503_vm1, %v525_v40 }
 0x27e   : > { %1074 = vmatmul.msk.f32.vlgmr.msra.gmra.mxu3 %vm467_vm0, %v556_v31 }
 0x284   : > { %v750_v41 = vpop.permute.xlu1 %749 }
 0x286   : > { %1075 = vmatmul.msk.f32.gmra.mxu3 %vm467_vm0, %v558_v8 }
 0x28e   : > { %1086 = vmatmul.msk.f32.vlgmr.msrb.gmra.mxu3 %vm467_vm0, %v750_v41 }
 0x293   : > { %v689_v42 = vpop.f32.mrf.mxu2 }
 0x294   : > { %v690_v43 = vadd.f32 %v689_v42, %v1691_v14 }
 0x296   : > { %1087 = vmatmul.msk.f32.gmra.mxu3 %vm467_vm0, %v752_v44  ;;  %v695_v45 = vsel %vm503_vm1, %v690_v43, -inf }
 0x297   : > { %696 = vmax.xlane.f32.xlu0 %v695_v45 }
 0x2f1   : > { %v1716_v46 = vpop.f32.mrf.mxu3 }
 0x2f9   : > { %v1718_v47 = vpop.f32.mrf.mxu3 }
 0x301   : > { %v588_v48 = vpop.f32.mrf.mxu3 }
 0x302   : > { %v589_v49 = vadd.f32 %v588_v48, %v1687_v10 }
 0x304   : > { %v594_v50 = vsel %vm503_vm1, %v589_v49, -inf }
 0x305   : > { %595 = vmax.xlane.f32.xlu1 %v594_v50 }
 0x309   : > { %v591_v52 = vpop.f32.mrf.mxu3 }
 0x30a   : > { %v592_v53 = vadd.f32 %v591_v52, %v1691_v14  ;;  %v697_v4 = vpop.xlane.xlu0 %696 }
 0x30b   : > { %v699_v5 = vsub.f32 %v690_v43, %v697_v4  ;;  %v887_v4 = vld [vmem:[#allocation10 + $0x50] sm:$0xff] }
 0x30c   : > { %v597_v55 = vsel %vm503_vm1, %v592_v53, -inf }
 0x30d   : > { %598 = vmax.xlane.f32.xlu0 %v597_v55  ;;  %v702_v6 = vmul.f32 1.442695, %v699_v5 }
 0x30f   : > { %1219 = vpow2.f32 %v702_v6  ;;  %v886_v6 = vld [vmem:[#allocation10 + $0x48] sm:$0xff] }
 0x311   : > { %v782_v57 = vpop.f32.mrf.mxu3 }
 0x312   : > { %v783_v58 = vadd.f32 %v782_v57, %v1687_v10 }
 0x314   : > { %v788_v59 = vsel %vm503_vm1, %v783_v58, -inf }
 0x315   : > { %789 = vmax.xlane.f32.xlu1 %v788_v59  ;;  %v1220_v7 = vpop.eup %1219 }
 0x316   : > { %v707_v8 = vsel %vm503_vm1, %v1220_v7, 0.0 }
 0x319   : > { %v785_v61 = vpop.f32.mrf.mxu3 }
 0x31a   : > { %v786_v62 = vadd.f32 %v785_v61, %v1691_v14  ;;  %v892_v61 = vld [vmem:[#allocation10 + $0x78] sm:$0xff] }
 0x31b   : > { %897 = vmatpush.msrb.mxu1 %v892_v61 }
 0x31c   : > { %v791_v63 = vsel %vm503_vm1, %v786_v62, -inf }
 0x31d   : > { %792 = vmax.xlane.f32.xlu2 %v791_v63  ;;  %705 = vadd.xlane.f32.xlu1 %v704_v0  ;;  %v890_v63 = vld [vmem:[#allocation10 + $0x68] sm:$0xff]  ;;  %v889_v0 = vld [vmem:[#allocation10 + $0x60] sm:$0xff] }
 0x321   : > { %1194 = vrot.lane.b32.xlu0 %v1193_v1, %s1476_s8 }
 0x34b   : > { %708 = vadd.xlane.f32.xlu0 %v707_v8  ;;  %v884_v8 = vld [vmem:[#allocation10 + $0x38] sm:$0xff] }
 0x378   : > { %v596_v9 = vpop.xlane.xlu1 %595 }
 0x379   : > { %v600_v10 = vsub.f32 %v589_v49, %v596_v9  ;;  %v883_v9 = vld [vmem:[#allocation10 + $0x30] sm:$0xff] }
 0x37b   : > { %v602_v11 = vmul.f32 1.442695, %v600_v10  ;;  %v882_v10 = vld [vmem:[#allocation10 + $0x28] sm:$0xff] }
 0x37d   : > { %1221 = vpow2.f32 %v602_v11  ;;  %v881_v11 = vld [vmem:[#allocation10 + $0x20] sm:$0xff] }
 0x380   : > { %v599_v12 = vpop.xlane.xlu0 %598 }
 0x381   : > { %v601_v13 = vsub.f32 %v592_v53, %v599_v12  ;;  %v880_v12 = vld [vmem:[#allocation10 + $0x18] sm:$0xff] }
 0x383   : > { %v1222_v14 = vpop.eup %1221  ;;  %v604_v15 = vmul.f32 1.442695, %v601_v13  ;;  %v879_v13 = vld [vmem:[#allocation10 + $0x10] sm:$0xff] }
 0x384   : > { %v606_v2 = vsel %vm503_vm1, %v1222_v14, 0.0 }
 0x385   : > { %1223 = vpow2.f32 %v604_v15  ;;  %607 = vadd.xlane.f32.xlu1 %v606_v2  ;;  %v877_v15 = vld [vmem:[#allocation10] sm:$0xff] }
 0x388   : > { %v790_v3 = vpop.xlane.xlu1 %789 }
 0x389   : > { %v794_v16 = vsub.f32 %v783_v58, %v790_v3 }
 0x38b   : > { %v1224_v17 = vpop.eup %1223  ;;  %v796_v18 = vmul.f32 1.442695, %v794_v16 }
 0x38c   : > { %v609_v19 = vsel %vm503_vm1, %v1224_v17, 0.0 }
 0x38d   : > { %1225 = vpow2.f32 %v796_v18  ;;  %610 = vadd.xlane.f32.xlu2 %v609_v19 }
 0x390   : > { %v793_v25 = vpop.xlane.xlu2 %792  ;;  %v706_v30 = vpop.xlane.xlu1 %705 }
 0x391   : > { %v795_v26 = vsub.f32 %v786_v62, %v793_v25  ;;  %v891_v62 = vld [vmem:[#allocation10 + $0x70] sm:$0xff] }
 0x392   : > { %898 = vmatpush.msrb.mxu1 %v891_v62 }
 0x393   : > { %v1226_v20 = vpop.eup %1225  ;;  %v1195_v21 = vpop.permute.xlu0 %1194  ;;  %v798_v27 = vmul.f32 1.442695, %v795_v26 }
 0x394   : > { %v800_v22 = vsel %vm503_vm1, %v1226_v20, 0.0  ;;  %v1196_v23 = vunpack.i.l.bf16 %v1195_v21  ;;  %v1197_v24 = vunpack.i.h.bf16 %v1195_v21  ;;  %899 = vmatpush.msrb.mxu1 %v890_v63 }
 0x395   : > { %801 = vadd.xlane.f32.xlu1 %v800_v22  ;;  %1227 = vpow2.f32 %v798_v27 }
 0x396   : > { %644 = vmatpush.msrb.mxu0 %v1196_v23  ;;  %900 = vmatpush.msrb.mxu1 %v889_v0 }
 0x398   : > { %645 = vmatpush.msrb.mxu0 %v1197_v24 }
 0x39b   : > { %v1228_v28 = vpop.eup %1227 }
 0x39c   : > { %v803_v29 = vsel %vm503_vm1, %v1228_v28, 0.0 }
 0x3a5   : > { %1199 = vrot.lane.b32.xlu2 %v1193_v1, %s1475_s27 }
 0x3ae   : > { %1204 = vrot.lane.b32.xlu1 %v1193_v1, %s1477_s14  ;;  %v888_v1 = vld [vmem:[#allocation10 + $0x58] sm:$0xff] }
 0x3af   : > { %901 = vmatpush.msrb.mxu1 %v888_v1 }
 0x3b1   : > { %902 = vmatpush.msrb.mxu1 %v887_v4 }
 0x3b3   : > { %903 = vmatpush.msrb.mxu1 %v886_v6 }
 0x3be   : > { %v709_v36 = vpop.xlane.xlu0 %708 }
 0x3ce   : > { %804 = vadd.xlane.f32.xlu2 %v803_v29 }
 0x3f8   : > { %v608_v31 = vpop.xlane.xlu1 %607 }
 0x3f9   : > { %1229 = vrcp.f32 %v608_v31 }
 0x3ff   : > { %v1230_v32 = vpop.eup %1229 }
 0x400   : > { %v611_v33 = vpop.xlane.xlu2 %610  ;;  %v614_v34 = vmul.f32 %v1230_v32, %v1222_v14  ;;  %v878_v14 = vld [vmem:[#allocation10 + $0x8] sm:$0xff] }
 0x401   : > { %1231 = vrcp.f32 %v611_v33 }
 0x402   : > { %1076 = vmatmul.msk.f32.vlgmr.msrb.gmra.mxu0 %vm503_vm1, %v614_v34  ;;  %1233 = vrcp.f32 %v706_v30 }
 0x403   : > { %1235 = vrcp.f32 %v709_v36 }
 0x407   : > { %v1232_v35 = vpop.eup %1231 }
 0x408   : > { %v1200_v37 = vpop.permute.xlu2 %1199  ;;  %v615_v38 = vmul.f32 %v1232_v35, %v1224_v17  ;;  %v1234_v39 = vpop.eup %1233 }
 0x409   : > { %v1201_v40 = vunpack.i.l.bf16 %v1200_v37  ;;  %v1202_v41 = vunpack.i.h.bf16 %v1200_v37  ;;  %v712_v42 = vmul.f32 %v1234_v39, %v1726_v60  ;;  %v1236_v43 = vpop.eup %1235  ;;  %v802_v45 = vpop.xlane.xlu1 %801 }
 0x40a   : > { %1077 = vmatmul.msk.f32.gmra.mxu0 %vm503_vm1, %v615_v38  ;;  %v713_v44 = vmul.f32 %v1236_v43, %v1220_v7  ;;  %1237 = vrcp.f32 %v802_v45  ;;  %v885_v7 = vld [vmem:[#allocation10 + $0x40] sm:$0xff] }
 0x40b   : > { %740 = vmatpush.msra.mxu2 %v1201_v40  ;;  %904 = vmatpush.msrb.mxu1 %v885_v7 }
 0x40d   : > { %741 = vmatpush.msra.mxu2 %v1202_v41  ;;  %905 = vmatpush.msrb.mxu1 %v884_v8 }
 0x40e   : > { %1082 = vmatmul.msk.f32.vlgmr.msra.gmra.mxu2 %vm503_vm1, %v712_v42 }
 0x40f   : > { %906 = vmatpush.msrb.mxu1 %v883_v9 }
 0x410   : > { %v1238_v49 = vpop.eup %1237 }
 0x411   : > { %v808_v52 = vmul.f32 %v1238_v49, %v1226_v20  ;;  %907 = vmatpush.msrb.mxu1 %v882_v10 }
 0x413   : > { %908 = vmatpush.msrb.mxu1 %v881_v11 }
 0x415   : > { %909 = vmatpush.msrb.mxu1 %v880_v12 }
 0x416   : > { %1083 = vmatmul.msk.f32.gmra.mxu2 %vm503_vm1, %v713_v44 }
 0x417   : > { %910 = vmatpush.msrb.mxu1 %v879_v13 }
 0x419   : > { %911 = vmatpush.msrb.mxu1 %v878_v14 }
 0x41b   : > { %912 = vmatpush.msrb.mxu1 %v877_v15 }
 0x420   : > { %v1205_v48 = vpop.permute.xlu1 %1204 }
 0x421   : > { %v1206_v50 = vunpack.i.l.bf16 %v1205_v48  ;;  %v1207_v51 = vunpack.i.h.bf16 %v1205_v48 }
 0x423   : > { %836 = vmatpush.msra.mxu0 %v1206_v50 }
 0x425   : > { %837 = vmatpush.msra.mxu0 %v1207_v51 }
 0x426   : > { %1088 = vmatmul.msk.f32.vlgmr.msra.gmra.mxu0 %vm503_vm1, %v808_v52 }
 0x441   : > { %v805_v53 = vpop.xlane.xlu2 %804 }
 0x442   : > { %1239 = vrcp.f32 %v805_v53 }
 0x448   : > { %v1240_v54 = vpop.eup %1239 }
 0x449   : > { %v809_v55 = vmul.f32 %v1240_v54, %v1228_v28 }
 0x44b   : > { %1089 = vmatmul.msk.f32.gmra.mxu0 %vm503_vm1, %v809_v55 }
 0x47f   : > { %v647_v56 = vpop.f32.mrf.mxu0 }
 0x487   : > { %v650_v58 = vpop.f32.mrf.mxu0 }
 0x491   : > { %v743_v57 = vpop.f32.mrf.mxu2 }
 0x492   : > { %855 = vrot.lane.b32.xlu1 %v743_v57, %s1475_s27 }
 0x499   : > { %v746_v60 = vpop.f32.mrf.mxu2 }
 0x49a   : > { %847 = vrot.lane.b32.xlu1 %v647_v56, %s1477_s14 }
 0x4a2   : > { %849 = vrot.lane.b32.xlu1 %v650_v58, %s1477_s14  ;;  %s1411_s14 = scalar_lea.hbm %s1803_s6, 32 }
 0x4a3   : > { %v839_v59 = vpop.f32.mrf.mxu0 }
 0x4a4   : > { %863 = vrot.lane.b32.xlu0 %v839_v59, %s1476_s8 }
 0x4aa   : > { %857 = vrot.lane.b32.xlu1 %v746_v60, %s1475_s27  ;;  %s1405_s27 = sshra.s32 %s938_s16, 4  ;;  %s1406_s27 = int_to_ptr.hbm [resolvable:$true] %s1405_s27 }
 0x4ab   : > { %p1412_p11 = scmp.lt.s32.totalorder %s1406_s27, %s1803_s6 }
 0x4c8   : > { %v842_v5 = vpop.f32.mrf.mxu0 }
 0x4c9   : > { %865 = vrot.lane.b32.xlu2 %v842_v5, %s1476_s8  ;;  %s1407_s8 = scalar_lea.hbm %s1406_s27, 16 }
 0x4ca   : > { %p1408_p1 = scmp.ne.s32.totalorder %s1406_s27, %s1407_s8  ;;  %p1413_p2 = scmp.lt.s32.totalorder %s1411_s14, %s1407_s8 }
 0x4cc   : > { %p1409_p4 = pnand %p1408_p1, %p1605_p3  ;;  %p1414_p9 = por %p1413_p2, %p1412_p11 }
 0x4ce   : > { %p1410_p8 = pneg %p1409_p4 }
 0x4d0   : > { %p1415_p10 = pnand %p1414_p9, %p1410_p8 }
 0x504   : > { %v856_v2 = vpop.permute.xlu1 %855 }
 0x50c   : > { %v848_v3 = vpop.permute.xlu1 %847 }
 0x50d   : > { %v869_v16 = vsel %vm467_vm0, %v1716_v46, %v848_v3  ;;  %v1208_v46 = vld [vmem:[%s1802_s5] ss:$0 sm:$0xff] }
 0x50e   : > { %v872_v19 = vsel %vm871_vm2, %v869_v16, %v856_v2 }
 0x514   : > { %v850_v17 = vpop.permute.xlu1 %849 }
 0x515   : > { %v870_v22 = vsel %vm467_vm0, %v1718_v47, %v850_v17 }
 0x516   : > { %v864_v18 = vpop.permute.xlu0 %863 }
 0x517   : > { %v875_v20 = vsel %vm874_vm3, %v872_v19, %v864_v18 }
 0x518   : > { %913 = vmatmul.f32.vlgmr.msrb.gmra.mxu1 %v875_v20 }
 0x51c   : > { %v858_v21 = vpop.permute.xlu1 %857 }
 0x51d   : > { %v873_v23 = vsel %vm871_vm2, %v870_v22, %v858_v21 }
 0x523   : > { %v866_v24 = vpop.permute.xlu2 %865 }
 0x524   : > { %v876_v25 = vsel %vm874_vm3, %v873_v23, %v866_v24 }
 0x525   : > { %916 = vmatmul.f32.gmra.mxu1 %v876_v25 }
 0x595   : > { %v914_v26 = vpop.f32.mrf.mxu1 }
 0x596   : > { %v915_v27 = vadd.f32 %v1208_v46, %v914_v26 }
 0x598   : > { %920 = vst [vmem:[%s335_s19] sm:$0xff] %v915_v27 }
 0x5a2   : > { %v917_v47 = vpop.f32.mrf.mxu1 }
 0x5a3   : > { %v918_v28 = vadd.f32 %v1208_v46, %v917_v47 }
 0x5a5   : > { %921 = vst [vmem:[%s335_s19 + $0x8] sm:$0xff] %v918_v28 }
 0x5a6   : > { %1418 = shalt.err (!%p1415_p10)
}
 0x5a7   : > { %s1478_s7 = smov 128   ;;  %s1479_s19 = smov 8  }
 0x5a8   : > { %1115 = dma.vmem_to_hbm [thread:$0]  (%p1605_p3), %s936_s13, 256, %s938_s16, %s923_s30, %s1478_s7, %s1478_s7, %s1479_s19  }
 0x5a9 PF: > { %s952_s9 = sand.u32 1, %s1453_s21   ;;  %p1814_p12 = scmp.ge.s32.totalorder %s1465_s24, 2 }
 0x5aa   : > { %s953_s10 = scalar_lea.sflag [#allocation4], %s952_s9 }
 0x5ab   : > { %p1135_p13 = pnand %p1814_p12, %p1550_p6 }
 0x5ad   : > { %p1136_p0 = pneg %p1135_p13 }
 0x5af   : > { %1448 = dma.done.wait (%p1136_p0), %s953_s10, 256  }
 0x5b0   : > { %1450 = vsyncadd (%p1136_p0), %s953_s10, 4294967040  ;;  %p21_p5 = scmp.ge.s32.totalorder %s1595_s18, 4   ;;  %s1815_s21 = smov %s1457_s22 }
 0x5b1   : > { %s1816_s22 = smov %s1461_s23  ;;  %s1817_s23 = smov %s1611_s29 }
 0x5b2   : > { %s1818_s24 = smov %s1595_s18  ;;  %23 = sbr.rel (!%p21_p5) target bundleno = 7 (0x7), region = 105 }
 0x5b7   :  { %959 = vsyncpa [#allocation3], 1 }
 0x5b8   :  { %961 = vsyncpa [#allocation3 + $0x1], 1 }
 0x5b9   :  { %962 = vsyncpa [#allocation6], 1 }
 0x5ba   :  { %963 = vsyncpa [#allocation9], 1 }
 0x5bb   :  { %964 = vsyncpa [#allocation4], 1 }
 0x5bc   :  { %966 = vsyncpa [#allocation4 + $0x1], 1 }

</bundles_post_ra>
